<compile_context>
chip_gen: v5e
topology: v5e:2x2
jax: 0.10.0
libtpu: 0.0.40
codegen_flags: <defaults>
</compile_context>

<pallas_src>
import jax
import jax.numpy as jnp
from jax.experimental import pallas as pl
from jax.experimental.pallas import tpu as pltpu


# --------------------------------------------------------------------------- #
# Kernels
# --------------------------------------------------------------------------- #
def _fold_kernel(xr_ref, xc_ref, d_ref, a_ref):
    """Default path: broadcasts + (-2) folded into one f32 MXU contraction.

    xr_ref: (bt, C, TM) row slice    xc_ref: (bt, C, TN) col slice
    d_ref : (bt, TM, TN) output      a_ref : (bt, C+2, TM) VMEM scratch
    """
    # Row-side augmented operand is invariant across the innermost (column)
    # grid axis -> build it only when j restarts (hoist).
    @pl.when(pl.program_id(2) == 0)
    def _build_row_operand():
        xr = xr_ref[...].astype(jnp.float32)                     # (bt, C, TM)
        xsq_r = jnp.sum(xr * xr, axis=1, keepdims=True)          # (bt, 1, TM)
        a_ref[...] = jnp.concatenate(
            [xr, xsq_r, jnp.ones_like(xsq_r)], axis=1)           # (bt, C+2, TM)

    xc = xc_ref[...].astype(jnp.float32)                         # (bt, C, TN)
    xsq_c = jnp.sum(xc * xc, axis=1, keepdims=True)              # (bt, 1, TN)
    b = jnp.concatenate(
        [-2.0 * xc, jnp.ones_like(xsq_c), xsq_c], axis=1)        # (bt, C+2, TN)

    d = jnp.einsum("bkm,bkn->bmn", a_ref[...], b,
                   preferred_element_type=jnp.float32)           # (bt, TM, TN)
    d_ref[...] = jnp.maximum(d, 0.0).astype(d_ref.dtype)


def _bf16_input_kernel(xr_ref, xc_ref, d_ref):
    """bf16-input path (C >= 128): bf16 MXU for -2*X^T X, xsq kept in f32."""
    xr = xr_ref[...]                                             # (bt, C, TM) bf16
    xc = xc_ref[...]                                             # (bt, C, TN) bf16

    xr32 = xr.astype(jnp.float32)
    xc32 = xc.astype(jnp.float32)
    xsq_r = jnp.sum(xr32 * xr32, axis=1, keepdims=True)          # (bt, 1, TM) f32
    xsq_c = jnp.sum(xc32 * xc32, axis=1, keepdims=True)          # (bt, 1, TN) f32

    # Rank-2 f32 contraction builds xsq_r (+) xsq_c without any transpose and
    # without pushing the norms through a bf16 matmul (precision concern).
    a2 = jnp.concatenate([xsq_r, jnp.ones_like(xsq_r)], axis=1)  # (bt, 2, TM)
    b2 = jnp.concatenate([jnp.ones_like(xsq_c), xsq_c], axis=1)  # (bt, 2, TN)
    xx = jnp.einsum("bkm,bkn->bmn", a2, b2,
                    preferred_element_type=jnp.float32)          # (bt, TM, TN)

    # -2 scale is exact in bf16 (power-of-two); products accumulate in f32.
    xtx2 = jnp.einsum("bkm,bkn->bmn", xr, -2.0 * xc,
                      preferred_element_type=jnp.float32)        # (bt, TM, TN)

    d_ref[...] = jnp.maximum(xx + xtx2, 0.0).astype(d_ref.dtype)


# --------------------------------------------------------------------------- #
# Wrapper
# --------------------------------------------------------------------------- #
def _generation_defaults():
    """Generation-aware tile / VMEM defaults (conservative fallback = v7x-safe)."""
    vmem = None
    try:
        info = pltpu.get_tpu_info()
        vmem = int(getattr(info, "vmem_capacity_bytes"))
    except Exception:
        vmem = None
    if vmem is not None and vmem >= 96 * 1024 * 1024:
        # v5e / v6e: 128 MiB VMEM -> bigger tile (8 MiB f32), 64 MiB scoped limit.
        return 1024, 2048, 64 * 1024 * 1024
    # v7x (64 MiB per TC) or unknown: 4 MiB f32 tile, 32 MiB scoped limit.
    return 512, 2048, 32 * 1024 * 1024


def _pick_batch_pack(B, N, itemsize, target_bytes=2 * 1024 * 1024):
    """Pack several batch maps per grid step when each (N,N) tile is tiny."""
    per_tile = N * N * itemsize
    if B <= 1 or per_tile >= target_bytes:
        return 1
    want = min(B, max(1, target_bytes // per_tile))
    # Prefer a divisor of B (no padded tail step); fall back to `want` if the
    # best divisor would throw away more than half of the packing benefit.
    best_div = max(d for d in range(1, want + 1) if B % d == 0)
    return best_div if 2 * best_div >= want else want


def contact_map(x, *, tm=None, tn=None, out_dtype=None, vmem_limit_bytes=None):
    """Pallas implementation of contactMap.forward.  x: (B, C, N) -> (B, N, N).

    out_dtype: the kernel is HBM-write-bound; passing jnp.bfloat16 halves the
    N^2 output stream (~2x end-to-end on v5e/v6e) at bf16 precision.  Defaults
    to x.dtype to match the PyTorch reference numerics.
    """
    B, C, N = x.shape
    out_dtype = jnp.dtype(x.dtype if out_dtype is None else out_dtype)

    tm_d, tn_d, vmem_d = _generation_defaults()
    tm = tm_d if tm is None else tm
    tn = tn_d if tn is None else tn
    vmem_limit = vmem_d if vmem_limit_bytes is None else vmem_limit_bytes

    # Clamp tiles to the problem; clamped tiles equal the full N dim, which
    # satisfies the (8,128) block rule.  Otherwise TM % 8 == 0 / TN % 128 == 0
    # keep the output stores lane-dense / unmasked.
    tm = min(tm, N)
    tn = min(tn, N)

    # Pack batch elements per step only when the whole per-batch map fits in a
    # single tile (amortizes ~0.35 us per-step overhead for small/medium N).
    bt = _pick_batch_pack(B, N, out_dtype.itemsize) if (tm == N and tn == N) else 1

    # bf16-input MXU path only pays off when C is non-trivial.
    fold = not (x.dtype == jnp.bfloat16 and C >= 128)

    if fold:
        kernel = _fold_kernel
        scratch_shapes = [pltpu.VMEM((bt, C + 2, tm), jnp.float32)]
        # Innermost axis must run 0..nj-1 in order for the row-operand hoist.
        semantics = ("parallel", "parallel", "arbitrary")
    else:
        kernel = _bf16_input_kernel
        scratch_shapes = []
        semantics = ("parallel", "parallel", "parallel")

    # N-tile axis first so v7x megacore shards even when B == 1 (or odd).
    grid = (pl.cdiv(N, tm), pl.cdiv(B, bt), pl.cdiv(N, tn))

    return pl.pallas_call(
        kernel,
        out_shape=jax.ShapeDtypeStruct((B, N, N), out_dtype),
        grid_spec=pltpu.PrefetchScalarGridSpec(
            num_scalar_prefetch=0,
            grid=grid,
            in_specs=[
                # Row slice  X[b*bt:(b+1)*bt, :, i*tm:(i+1)*tm]
                pl.BlockSpec((bt, C, tm), lambda i, b, j: (b, 0, i)),
                # Col slice  X[b*bt:(b+1)*bt, :, j*tn:(j+1)*tn]
                pl.BlockSpec((bt, C, tn), lambda i, b, j: (b, 0, j)),
            ],
            out_specs=pl.BlockSpec((bt, tm, tn), lambda i, b, j: (b, i, j)),
            scratch_shapes=scratch_shapes,
        ),
        compiler_params=pltpu.CompilerParams(
            dimension_semantics=semantics,
            vmem_limit_bytes=vmem_limit,
        ),
    )(x, x)


# --------------------------------------------------------------------------- #
# Pure-JAX reference (matches the PyTorch forward)
# --------------------------------------------------------------------------- #
def contact_map_ref(x, precision=jax.lax.Precision.HIGHEST):
    x32 = x.astype(jnp.float32)
    xsq = jnp.sum(x32 * x32, axis=1, keepdims=True)                  # (B, 1, N)
    xx = xsq + jnp.swapaxes(xsq, 1, 2)                               # (B, N, N)
    xtx = jnp.einsum("bcn,bcm->bnm", x, x, precision=precision,
                     preferred_element_type=jnp.float32)             # X^T X
    return jnp.maximum(xx - 2.0 * xtx, 0.0)


if __name__ == "__main__":
    key = jax.random.PRNGKey(0)
    k0, k1, k2 = jax.random.split(key, 3)

    # 1) Small shape implied by the module: batch=2, embdsize=4, seq len=16.
    B, C, N = 2, 4, 16
    x = jax.random.normal(k0, (B, C, N), dtype=jnp.float32)
    d = jax.block_until_ready(contact_map(x))
    d_ref = contact_map_ref(x)
    assert d.shape == (B, N, N)
    assert jnp.allclose(d, d_ref, atol=5e-4, rtol=5e-4), "mismatch (small)"

    # 2) Multi-tile grid with partial edge tiles + row-operand hoist across j.
    B2, C2, N2 = 2, 3, 640
    x2 = jax.random.normal(k1, (B2, C2, N2), dtype=jnp.float32)
    d2 = jax.block_until_ready(contact_map(x2, tm=512, tn=512))
    d2_ref = contact_map_ref(x2)
    assert d2.shape == (B2, N2, N2)
    assert jnp.allclose(d2, d2_ref, atol=5e-4, rtol=5e-4), "mismatch (tiled)"

    # 3) bf16-output fast path (halves the binding HBM write stream).
    d2_bf = jax.block_until_ready(contact_map(x2, out_dtype=jnp.bfloat16))
    assert d2_bf.dtype == jnp.bfloat16
    assert jnp.allclose(d2_bf.astype(jnp.float32), d2_ref,
                        atol=1e-1, rtol=2e-2), "mismatch (bf16 out)"

    # 4) bf16-input path (C >= 128): bf16 MXU contraction, f32 broadcasts.
    B3, C3, N3 = 1, 128, 256
    x3 = jax.random.normal(k2, (B3, C3, N3), dtype=jnp.float32).astype(jnp.bfloat16)
    d3 = jax.block_until_ready(contact_map(x3, out_dtype=jnp.float32))
    d3_ref = contact_map_ref(x3, precision=jax.lax.Precision.DEFAULT)
    assert d3.shape == (B3, N3, N3)
    assert jnp.allclose(d3, d3_ref, atol=1e-2, rtol=1e-3), "mismatch (bf16 in)"

    print("KERNEL_OK")
</pallas_src>

<mosaic_0001>
module attributes {stable_mosaic.version = 11 : i64} {
  func.func @_fold_kernel(%arg0: i32, %arg1: i32, %arg2: i32, %arg3: memref<2x4x16xf32, #tpu.memory_space<vmem>>, %arg4: memref<2x4x16xf32, #tpu.memory_space<vmem>>, %arg5: memref<2x16x16xf32, #tpu.memory_space<vmem>>, %arg6: memref<2x6x16xf32, #tpu.memory_space<vmem>>) attributes {dimension_semantics = [#tpu.dimension_semantics<parallel>, #tpu.dimension_semantics<parallel>, #tpu.dimension_semantics<arbitrary>], iteration_bounds = array<i64: 1, 1, 1>, scalar_prefetch = 0 : i64, scratch_operands = 1 : i64, tpu.core_type = #tpu.core_type<tc>, window_params = [{transform_indices = @transform_0, window_bounds = array<i64: 2, 4, 16>}, {transform_indices = @transform_1, window_bounds = array<i64: 2, 4, 16>}, {transform_indices = @transform_2, window_bounds = array<i64: 2, 16, 16>}]} {
    %c0_i32 = arith.constant 0 : i32
    %0 = arith.cmpi eq, %arg2, %c0_i32 : i32
    %1 = arith.extui %0 : i1 to i32
    %c0_i32_0 = arith.constant 0 : i32
    %2 = arith.cmpi ne, %1, %c0_i32_0 : i32
    scf.if %2 {
      %c0_13 = arith.constant 0 : index
      %c0_14 = arith.constant 0 : index
      %c0_15 = arith.constant 0 : index
      %16 = vector.load %arg3[%c0_13, %c0_14, %c0_15] : memref<2x4x16xf32, #tpu.memory_space<vmem>>, vector<2x4x16xf32>
      %17 = arith.mulf %16, %16 : vector<2x4x16xf32>
      %cst_16 = arith.constant dense<0.000000e+00> : vector<2x16xf32>
      %18 = vector.multi_reduction <add>, %17, %cst_16 [1] : vector<2x4x16xf32> to vector<2x16xf32>
      %19 = vector.shape_cast %18 : vector<2x16xf32> to vector<2x1x16xf32>
      %cst_17 = arith.constant 1.000000e+00 : f32
      %20 = vector.broadcast %cst_17 : f32 to vector<2x1x16xf32>
      %21 = tpu.concatenate %16, %19, %20 in 1 : vector<2x4x16xf32>, vector<2x1x16xf32>, vector<2x1x16xf32> -> vector<2x6x16xf32>
      %c0_18 = arith.constant 0 : index
      %c0_19 = arith.constant 0 : index
      %c0_20 = arith.constant 0 : index
      %22 = vector.load %arg6[%c0_18, %c0_19, %c0_20] : memref<2x6x16xf32, #tpu.memory_space<vmem>>, vector<2x6x16xf32>
      tpu.vector_store %arg6[%c0_18, %c0_19, %c0_20], %21 {strides = array<i32>} : memref<2x6x16xf32, #tpu.memory_space<vmem>>, vector<2x6x16xf32>,
    } else {
    }
    %c0 = arith.constant 0 : index
    %c0_1 = arith.constant 0 : index
    %c0_2 = arith.constant 0 : index
    %3 = vector.load %arg4[%c0, %c0_1, %c0_2] : memref<2x4x16xf32, #tpu.memory_space<vmem>>, vector<2x4x16xf32>
    %4 = arith.mulf %3, %3 : vector<2x4x16xf32>
    %cst = arith.constant dense<0.000000e+00> : vector<2x16xf32>
    %5 = vector.multi_reduction <add>, %4, %cst [1] : vector<2x4x16xf32> to vector<2x16xf32>
    %6 = vector.shape_cast %5 : vector<2x16xf32> to vector<2x1x16xf32>
    %cst_3 = arith.constant -2.000000e+00 : f32
    %7 = vector.broadcast %cst_3 : f32 to vector<2x4x16xf32>
    %8 = arith.mulf %7, %3 : vector<2x4x16xf32>
    %cst_4 = arith.constant 1.000000e+00 : f32
    %9 = vector.broadcast %cst_4 : f32 to vector<2x1x16xf32>
    %10 = tpu.concatenate %8, %9, %6 in 1 : vector<2x4x16xf32>, vector<2x1x16xf32>, vector<2x1x16xf32> -> vector<2x6x16xf32>
    %c0_5 = arith.constant 0 : index
    %c0_6 = arith.constant 0 : index
    %c0_7 = arith.constant 0 : index
    %11 = vector.load %arg6[%c0_5, %c0_6, %c0_7] : memref<2x6x16xf32, #tpu.memory_space<vmem>>, vector<2x6x16xf32>
    "tpu.trace_start"() <{level = 10 : i32, message = "bkm,bkn->bmn"}> : () -> ()
    %cst_8 = arith.constant dense<0.000000e+00> : vector<2x16x16xf32>
    %12 = tpu.matmul %11, %10, %cst_8 {dimension_numbers = #tpu.dot_dimension_numbers<[1], [1], [2], [2], [0, 0, 0, 2, 1, 2], [0], [0]>} : vector<2x6x16xf32>, vector<2x6x16xf32>, vector<2x16x16xf32> -> vector<2x16x16xf32>
    "tpu.trace_stop"() : () -> ()
    %cst_9 = arith.constant 0.000000e+00 : f32
    %13 = vector.broadcast %cst_9 : f32 to vector<2x16x16xf32>
    %14 = arith.maximumf %12, %13 : vector<2x16x16xf32>
    %c0_10 = arith.constant 0 : index
    %c0_11 = arith.constant 0 : index
    %c0_12 = arith.constant 0 : index
    %15 = vector.load %arg5[%c0_10, %c0_11, %c0_12] : memref<2x16x16xf32, #tpu.memory_space<vmem>>, vector<2x16x16xf32>
    tpu.vector_store %arg5[%c0_10, %c0_11, %c0_12], %14 {strides = array<i32>} : memref<2x16x16xf32, #tpu.memory_space<vmem>>, vector<2x16x16xf32>,
    return
  }
  func.func @transform_0(%arg0: i32, %arg1: i32, %arg2: i32) -> (i32, i32, i32) {
    %c0_i32 = arith.constant 0 : i32
    %c0_i32_0 = arith.constant 0 : i32
    return %arg1, %c0_i32, %arg0 : i32, i32, i32
  }
  func.func @transform_1(%arg0: i32, %arg1: i32, %arg2: i32) -> (i32, i32, i32) {
    %c0_i32 = arith.constant 0 : i32
    %c0_i32_0 = arith.constant 0 : i32
    return %arg1, %c0_i32, %arg2 : i32, i32, i32
  }
  func.func @transform_2(%arg0: i32, %arg1: i32, %arg2: i32) -> (i32, i32, i32) {
    %c0_i32 = arith.constant 0 : i32
    return %arg1, %arg0, %arg2 : i32, i32, i32
  }
}

</mosaic_0001>

<bundles_post_ra>
// kernel: tpu_custom_call.1
= control target key start
LH: loop header
LB: loop body
LE: loop exit
PB: predicated region body
PF: predicated region fallthrough
CT: control target
= control target key end

     0   :  { %7 = vsyncpa [#allocation4], 0  ;;  %s409_s0 = inlined_call_operand.hbm [shape: f32[2,4,16], index: 0, kind: input, shape index: {}]   ;;  %s410_s1 = inlined_call_operand.hbm [shape: f32[2,4,16], index: 1, kind: input, shape index: {}]   ;;  %s411_s2 = inlined_call_operand.hbm [shape: f32[2,16,16], index: 2, kind: output, shape index: {}]  }
   0x1   :  { %8 = vsyncpa [#allocation7], 0 }
   0x2   :  { %9 = vsyncpa [#allocation5], 0  ;;  %s14_s11 = sshll.u32 %s409_s0, 4  ;;  %s358_s12 = smov [#allocation3]   ;;  %s15_s11 = int_to_ptr.hbm [resolvable:$true] %s14_s11 }
   0x3   :  { %s16_s13 = sshll.u32 %s358_s12, 4  ;;  %s27_s16 = sshll.u32 %s410_s1, 4  ;;  %s17_s13 = int_to_ptr.vmem [resolvable:$true] %s16_s13  ;;  %s28_s16 = int_to_ptr.hbm [resolvable:$true] %s27_s16 }
   0x4   :  { %s359_s17 = smov 64   ;;  %s360_s18 = smov 4  }
   0x5   :  { %22 = dma.hbm_to_vmem [thread:$0]  %s15_s11, 128, %s17_s13, [#allocation4], %s359_s17, %s359_s17, %s360_s18  }
   0x6   :  { %s361_s19 = smov [#allocation6]  }
   0x7   :  { %s29_s20 = sshll.u32 %s361_s19, 4  ;;  %s30_s20 = int_to_ptr.vmem [resolvable:$true] %s29_s20 }
   0x8   :  { %35 = dma.hbm_to_vmem [thread:$0]  %s28_s16, 128, %s30_s20, [#allocation7], %s359_s17, %s359_s17, %s360_s18  }
   0x9   :  { %352 = dma.done.wait [#allocation4], 128  }
   0xa   :  { %353 = vsyncadd [#allocation4], 4294967168 }
   0xb   :  { %354 = dma.done.wait [#allocation7], 128  }
   0xc   :  { %355 = vsyncadd [#allocation7], 4294967168  ;;  %v48_v0 = vld [vmem:[#allocation3] sm:$0xf]  ;;  %vm52_vm0 = vcmask 125952   ;;  %vm67_vm1 = vcmask 1043456  }
   0xd   :  { %v49_v1 = vld [vmem:[#allocation3 + $0x4] sm:$0xf]  ;;  %v50_v2 = vmul.f32 %v48_v0, %v48_v0  ;;  %v76_v14 = vld [vmem:[#allocation6] sm:$0xf]  ;;  %vm70_vm2 = vcmask 1044480   ;;  %vm73_vm3 = vcmask 128000  }
   0xe   :  { %v51_v3 = vmul.f32 %v49_v1, %v49_v1  ;;  %v78_v15 = vmul.f32 %v76_v14, %v76_v14  ;;  %v95_v28 = vmul.f32 -2.0, %v76_v14  ;;  %vm144_vm4 = vcmask 1045504   ;;  %v77_v36 = vld [vmem:[#allocation6 + $0x4] sm:$0xf]  ;;  %s362_s0 = smov [#allocation8]   ;;  %s250_s23 = sshll.u32 %s411_s2, 4  ;;  %s251_s23 = int_to_ptr.hbm [resolvable:$true] %s250_s23 }
   0xf   :  { %v53_v4 = vsel %vm52_vm0, %v50_v2, 0.0  ;;  %v79_v37 = vmul.f32 %v77_v36, %v77_v36  ;;  %v96_v43 = vmul.f32 -2.0, %v77_v36  ;;  %vm137_vm5 = vcmask 48128   ;;  %s248_s1 = sshll.u32 %s362_s0, 4  ;;  %s363_s24 = smov 128   ;;  %s249_s1 = int_to_ptr.vmem [resolvable:$true] %s248_s1 }
  0x10   :  { %v60_v5 = vsel %vm52_vm0, %v51_v3, 0.0  ;;  %v54_v6 = vrot.slane %v53_v4, 4  ;;  %v81_v18 = vsel %vm52_vm0, %v78_v15, 0.0  ;;  %v98_v31 = vsel %vm67_vm1, %v95_v28, 1.0  ;;  %s364_s25 = smov 8  }
  0x11   :  { %v61_v7 = vrot.slane %v60_v5, 4  ;;  %v82_v21 = vrot.slane %v81_v18, 4  ;;  %v88_v38 = vsel %vm52_vm0, %v79_v37, 0.0  ;;  %v99_v45 = vsel %vm67_vm1, %v96_v43, 1.0 }
  0x12   :  { %v55_v8 = vadd.f32 %v54_v6, %v53_v4  ;;  %v89_v39 = vrot.slane %v88_v38, 4  ;;  %vm239_vm6 = vcmask 130048  }
  0x13   :  { %v62_v9 = vadd.f32 %v61_v7, %v60_v5  ;;  %v83_v24 = vadd.f32 %v82_v21, %v81_v18 }
  0x14   :  { %v56_v10 = vrot.slane %v55_v8, 2  ;;  %v90_v40 = vadd.f32 %v89_v39, %v88_v38 }
  0x15   :  { %v63_v11 = vrot.slane %v62_v9, 2  ;;  %v84_v27 = vrot.slane %v83_v24, 2 }
  0x16   :  { %v57_v12 = vadd.f32 %v56_v10, %v55_v8  ;;  %v91_v41 = vrot.slane %v90_v40, 2 }
  0x17   :  { %v64_v13 = vadd.f32 %v63_v11, %v62_v9  ;;  %v85_v29 = vadd.f32 %v84_v27, %v83_v24 }
  0x18   :  { %v58_v16 = vrot.slane %v57_v12, 1  ;;  %v92_v42 = vadd.f32 %v91_v41, %v90_v40 }
  0x19   :  { %v65_v17 = vrot.slane %v64_v13, 1  ;;  %v86_v30 = vrot.slane %v85_v29, 1 }
  0x1a   :  { %v59_v19 = vadd.f32 %v58_v16, %v57_v12  ;;  %v93_v44 = vrot.slane %v92_v42, 1 }
  0x1b   :  { %v66_v20 = vadd.f32 %v65_v17, %v64_v13  ;;  %v87_v32 = vadd.f32 %v86_v30, %v85_v29 }
  0x1c   :  { %v68_v22 = vsel %vm67_vm1, %v48_v0, %v59_v19  ;;  %v94_v46 = vadd.f32 %v93_v44, %v92_v42 }
  0x1d   :  { %v69_v23 = vsel %vm67_vm1, %v49_v1, %v66_v20  ;;  %v71_v25 = vsel %vm70_vm2, %v68_v22, 1.0  ;;  %v101_v34 = vsel %vm70_vm2, %v98_v31, %v87_v32 }
  0x1e   :  { %v72_v26 = vsel %vm70_vm2, %v69_v23, 1.0  ;;  %74 = vst.msk [vmem:[#allocation2] sm:$0x3f] %vm73_vm3, %v71_v25  ;;  %264 = vmatpush.msk.msra.mxu0 %vm144_vm4, %v101_v34  ;;  %270 = vmatpush.msk.msra.mxu2 %vm144_vm4, %v101_v34  ;;  %v102_v47 = vsel %vm70_vm2, %v99_v45, %v94_v46 }
  0x1f   :  { %75 = vst.msk [vmem:[#allocation2 + $0x8] sm:$0x3f] %vm73_vm3, %v72_v26  ;;  %267 = vmatpush.msk.msra.mxu1 %vm144_vm4, %v102_v47  ;;  %271 = vmatpush.msk.msra.mxu3 %vm144_vm4, %v102_v47 }
  0x25   :  { %v103_v33 = vld [vmem:[#allocation2] sm:$0x3f] }
  0x26   :  { %105 = vxpose.xlu0.b32.start.end [1/1] (short) (narrow) %v103_v33, 16  ;;  %v104_v35 = vld [vmem:[#allocation2 + $0x8] sm:$0x3f] }
  0x36   :  { %171 = vxpose.xlu0.b32.start.end [1/1] (short) (narrow) %v104_v35, 16 }
  0xca   :  { %v121_v48 = vpop.trf.xlu0 }
  0xcb   :  { %265 = vmatmul.msk.f32.vlgmr.msra.gmra.mxu0 %vm137_vm5, %v121_v48 }
  0xd2   :  { %v122_v49 = vpop.trf.xlu0 }
  0xd3   :  { %266 = vmatmul.msk.f32.vlgmr.msra.gmra.mxu2 %vm137_vm5, %v122_v49 }
  0xda   :  { %v187_v50 = vpop.trf.xlu0 }
  0xdb   :  { %268 = vmatmul.msk.f32.vlgmr.msra.gmra.mxu1 %vm137_vm5, %v187_v50 }
  0xe2   :  { %v188_v51 = vpop.trf.xlu0 }
  0xe3   :  { %269 = vmatmul.msk.f32.vlgmr.msra.gmra.mxu3 %vm137_vm5, %v188_v51 }
 0x148   :  { %v165_v52 = vpop.f32.mrf.mxu0 }
 0x149   :  { %v235_v53 = vmax.f32 %v165_v52, 0.0 }
 0x14b   :  { %240 = vst.msk [vmem:[#allocation8] sm:$0xff] %vm239_vm6, %v235_v53 }
 0x156   :  { %v168_v54 = vpop.f32.mrf.mxu2 }
 0x157   :  { %v236_v55 = vmax.f32 %v168_v54, 0.0 }
 0x158   :  { %v229_v56 = vpop.f32.mrf.mxu1 }
 0x159   :  { %241 = vst.msk [vmem:[#allocation8 + $0x8] sm:$0xff] %vm239_vm6, %v236_v55  ;;  %v237_v57 = vmax.f32 %v229_v56, 0.0 }
 0x15b   :  { %242 = vst.msk [vmem:[#allocation8 + $0x10] sm:$0xff] %vm239_vm6, %v237_v57 }
 0x166   :  { %v232_v58 = vpop.f32.mrf.mxu3 }
 0x167   :  { %v238_v59 = vmax.f32 %v232_v58, 0.0 }
 0x169   :  { %243 = vst.msk [vmem:[#allocation8 + $0x18] sm:$0xff] %vm239_vm6, %v238_v59 }
 0x16a   :  { %256 = dma.vmem_to_hbm [thread:$0]  %s249_s1, 512, %s251_s23, [#allocation5], %s363_s24, %s363_s24, %s364_s25  }
 0x16b   :  { %356 = dma.done.wait [#allocation5], 512  }
 0x16c   :  { %357 = vsyncadd [#allocation5], 4294966784 }
 0x16d   :  { %261 = vsyncpa [#allocation4], 1 }
 0x16e   :  { %262 = vsyncpa [#allocation7], 1 }
 0x16f   :  { %263 = vsyncpa [#allocation5], 1 }

</bundles_post_ra>
